<compile_context>
chip_gen: v7x
topology: tpu7x:2x2x1
jax: 0.10.0
libtpu: 0.0.40
codegen_flags: <defaults>
</compile_context>

<pallas_src>
import jax
import jax.numpy as jnp
from jax.experimental import pallas as pl
from jax.experimental.pallas import tpu as pltpu  # noqa: F401  (TPU backend module)


def _linear_kernel(x_ref, p_ref, o_ref):
    """o = x @ w_t + b on the VPU as unrolled outer products.

    x_ref: (M, K)        activations
    p_ref: (K + 1, N)    rows [0:K] = weight.T, row [K] = bias
    o_ref: (M, N)        output
    """
    m, n = o_ref.shape
    k_dim = x_ref.shape[1]
    x = x_ref[...]
    p = p_ref[...]
    wt = p[:k_dim, :]                                   # (K, N)
    bias = p[k_dim:k_dim + 1, :]                        # (1, N)
    # Explicit bias broadcast (robust vs. implicit 1-sublane broadcast).
    acc = jnp.broadcast_to(bias.astype(jnp.float32), (m, n))
    # K is tiny (3): unrolled sum of rank-1 updates; no MXU push/pop, no K padding.
    # NOTE: if K ever grows beyond a handful, switch to jnp.dot / restructure so the
    # per-k broadcast operand lies along sublanes (the (M,1)->(M,N) lane broadcast
    # scales linearly with K).
    for k in range(k_dim):
        acc = acc + x[:, k:k + 1] * wt[k:k + 1, :]
    o_ref[...] = acc


def linear_pallas(x, params):
    """Compute x @ w_t + b with a single-block Pallas TPU kernel.

    x:      (M, K)     float32
    params: (K + 1, N) float32, rows [0:K] = weight.T, row [K] = bias
    """
    M, K = x.shape
    Kp1, N = params.shape
    assert Kp1 == K + 1

    # Full-array blocks: block == array dims, so no (8,128) divisibility requirement,
    # no host-side padding buffers, no output slice.  Single grid point, no grid.
    return pl.pallas_call(
        _linear_kernel,
        out_shape=jax.ShapeDtypeStruct((M, N), jnp.float32),
        in_specs=[
            pl.BlockSpec((M, K), lambda: (0, 0)),
            pl.BlockSpec((Kp1, N), lambda: (0, 0)),
        ],
        out_specs=pl.BlockSpec((M, N), lambda: (0, 0)),
    )(x, params)


def pack_params(weight, bias):
    """Build the (K + 1, N) packed parameter buffer ONCE, outside the per-call path."""
    w_t = weight.T                                      # (K, N)
    return jnp.concatenate([w_t, bias.reshape(1, -1)], axis=0)


def model_forward(x, weight, bias):
    """Reproduces Model.forward output exactly.

    x:      (M, 3)
    weight: (4, 3)   torch nn.Linear weight
    bias:   (4,)
    returns (4, 3 * M * 4) float32 zeros — the torch graph's output never depends on
    the linear's values, so the pallas_call is deliberately NOT launched here
    (the zeros/repeat/permute/view/transpose chain constant-folds to this shape).
    """
    m = x.shape[0]
    out_features = weight.shape[0]
    # zeros_like(y).repeat(3,4) -> (3m, 4*out); permute/view(4,-1)/transpose/permute
    # -> (4, 3*m*out).  For m=2, out=4 this is (4, 24).
    # TODO(synk): torch .view(4,-1) on the permuted (non-contiguous) tensor would raise
    # in eager PyTorch; this reproduces the intended shape (data is all zeros anyway).
    return jnp.zeros((4, 3 * m * out_features), jnp.float32)


if __name__ == "__main__":
    key = jax.random.PRNGKey(0)
    k_x, k_w, k_b = jax.random.split(key, 3)

    # Deterministic synthetic parameters for nn.Linear(3, 4): weight (4, 3), bias (4,)
    x = jax.random.normal(k_x, (2, 3), dtype=jnp.float32)
    weight = jax.random.normal(k_w, (4, 3), dtype=jnp.float32) * 0.1
    bias = jax.random.normal(k_b, (4,), dtype=jnp.float32) * 0.1

    # 1) Run & validate the Pallas addmm kernel (the module's only real compute).
    #    Parameters are packed once outside the jitted per-call path (2 input DMAs).
    params = jax.block_until_ready(pack_params(weight, bias))
    linear_fn = jax.jit(linear_pallas)
    y = jax.block_until_ready(linear_fn(x, params))
    y_ref = x @ weight.T + bias
    assert y.shape == (2, 4), y.shape
    assert jnp.allclose(y, y_ref, atol=1e-5, rtol=1e-5)

    # 2) Full forward: constant (4, 24) zero tensor, no kernel launch in the hot path.
    fwd = jax.jit(model_forward)
    out = jax.block_until_ready(fwd(x, weight, bias))
    assert out.shape == (4, 24), out.shape
    assert out.dtype == jnp.float32, out.dtype
    assert not bool(jnp.any(out))

    print("KERNEL_OK")
</pallas_src>

<mosaic_0001>
module attributes {stable_mosaic.version = 11 : i64} {
  func.func @_linear_kernel(%arg0: memref<2x3xf32, #tpu.memory_space<vmem>>, %arg1: memref<4x4xf32, #tpu.memory_space<vmem>>, %arg2: memref<2x4xf32, #tpu.memory_space<vmem>>) attributes {dimension_semantics = [], scalar_prefetch = 0 : i64, scratch_operands = 0 : i64, tpu.core_type = #tpu.core_type<tc>} {
    %c0 = arith.constant 0 : index
    %c0_0 = arith.constant 0 : index
    %0 = vector.load %arg0[%c0, %c0_0] : memref<2x3xf32, #tpu.memory_space<vmem>>, vector<2x3xf32>
    %c0_1 = arith.constant 0 : index
    %c0_2 = arith.constant 0 : index
    %1 = vector.load %arg1[%c0_1, %c0_2] : memref<4x4xf32, #tpu.memory_space<vmem>>, vector<4x4xf32>
    %2 = vector.extract_strided_slice %1 {offsets = [0, 0], sizes = [3, 4], strides = [1, 1]} : vector<4x4xf32> to vector<3x4xf32>
    %3 = vector.extract_strided_slice %1 {offsets = [3, 0], sizes = [1, 4], strides = [1, 1]} : vector<4x4xf32> to vector<1x4xf32>
    %4 = vector.shape_cast %3 : vector<1x4xf32> to vector<1x4xf32>
    %5 = vector.broadcast %4 : vector<1x4xf32> to vector<2x4xf32>
    %6 = vector.extract_strided_slice %0 {offsets = [0, 0], sizes = [2, 1], strides = [1, 1]} : vector<2x3xf32> to vector<2x1xf32>
    %7 = vector.extract_strided_slice %2 {offsets = [0, 0], sizes = [1, 4], strides = [1, 1]} : vector<3x4xf32> to vector<1x4xf32>
    %8 = vector.broadcast %6 : vector<2x1xf32> to vector<2x4xf32>
    %9 = vector.broadcast %7 : vector<1x4xf32> to vector<2x4xf32>
    %10 = arith.mulf %8, %9 : vector<2x4xf32>
    %11 = arith.addf %5, %10 : vector<2x4xf32>
    %12 = vector.extract_strided_slice %0 {offsets = [0, 1], sizes = [2, 1], strides = [1, 1]} : vector<2x3xf32> to vector<2x1xf32>
    %13 = vector.extract_strided_slice %2 {offsets = [1, 0], sizes = [1, 4], strides = [1, 1]} : vector<3x4xf32> to vector<1x4xf32>
    %14 = vector.broadcast %12 : vector<2x1xf32> to vector<2x4xf32>
    %15 = vector.broadcast %13 : vector<1x4xf32> to vector<2x4xf32>
    %16 = arith.mulf %14, %15 : vector<2x4xf32>
    %17 = arith.addf %11, %16 : vector<2x4xf32>
    %18 = vector.extract_strided_slice %0 {offsets = [0, 2], sizes = [2, 1], strides = [1, 1]} : vector<2x3xf32> to vector<2x1xf32>
    %19 = vector.extract_strided_slice %2 {offsets = [2, 0], sizes = [1, 4], strides = [1, 1]} : vector<3x4xf32> to vector<1x4xf32>
    %20 = vector.broadcast %18 : vector<2x1xf32> to vector<2x4xf32>
    %21 = vector.broadcast %19 : vector<1x4xf32> to vector<2x4xf32>
    %22 = arith.mulf %20, %21 : vector<2x4xf32>
    %23 = arith.addf %17, %22 : vector<2x4xf32>
    %c0_3 = arith.constant 0 : index
    %c0_4 = arith.constant 0 : index
    %24 = vector.load %arg2[%c0_3, %c0_4] : memref<2x4xf32, #tpu.memory_space<vmem>>, vector<2x4xf32>
    tpu.vector_store %arg2[%c0_3, %c0_4], %23 {strides = array<i32>} : memref<2x4xf32, #tpu.memory_space<vmem>>, vector<2x4xf32>,
    return
  }
}

</mosaic_0001>

<bundles_post_ra>
// kernel: linear_pallas.1
= control target key start
LH: loop header
LB: loop body
LE: loop exit
PB: predicated region body
PF: predicated region fallthrough
CT: control target
= control target key end

     0   :  { %7 = vsyncpa [#allocation3], 0  ;;  %s230_s0 = inlined_call_operand.hbm [shape: f32[2,3], index: 0, kind: input, shape index: {}]   ;;  %s231_s1 = inlined_call_operand.hbm [shape: f32[4,4], index: 1, kind: input, shape index: {}]   ;;  %s232_s2 = inlined_call_operand.hbm [shape: f32[2,4], index: 2, kind: output, shape index: {}]  }
   0x1   :  { %8 = vsyncpa [#allocation6], 0 }
   0x2   :  { %9 = vsyncpa [#allocation4], 0  ;;  %s173_s9 = smov [#allocation2]   ;;  %s174_s11 = smov [#allocation5]  }
   0x3   :  { %s16_s10 = sshll.u32 %s173_s9, 4  ;;  %s26_s12 = sshll.u32 %s174_s11, 4  ;;  %s17_s10 = int_to_ptr.vmem [resolvable:$true] %s16_s10  ;;  %s27_s12 = int_to_ptr.vmem [resolvable:$true] %s26_s12 }
   0x4   :  { %s101_s15 = scalar_lea.hbm %s230_s0, 32 }
   0x5   :  { %p102_p0 = scmp.ne.s32.totalorder %s230_s0, %s101_s15  ;;  %p105_p1 = scmp.lt.u32.totalorder %s101_s15, %s230_s0 }
   0x7   :  { %p107_p2 = pnand %p105_p1, %p102_p0 }
   0x9   :  { %110 = shalt.err (!%p107_p2)
}
   0xa   :  { %s111_s20 = scalar_lea.vmem %s17_s10, 32  ;;  %p116_p4 = scmp.lt.s32.totalorder %s17_s10, %s17_s10 }
   0xb   :  { %p112_p3 = scmp.ne.s32.totalorder %s17_s10, %s111_s20  ;;  %p117_p5 = scmp.lt.s32.totalorder %s111_s20, %s111_s20 }
   0xd   :  { %p118_p6 = por %p117_p5, %p116_p4 }
   0xf   :  { %p119_p7 = pnand %p118_p6, %p112_p3 }
  0x11   :  { %122 = shalt.err (!%p119_p7)
}
  0x12   :  { %19 = dma.hbm_to_vmem [thread:$0]  %s230_s0, 32, %s17_s10, [#allocation3]  }
  0x13   :  { %s123_s25 = scalar_lea.hbm %s231_s1, 64 }
  0x14   :  { %p124_p8 = scmp.ne.s32.totalorder %s231_s1, %s123_s25  ;;  %p127_p9 = scmp.lt.u32.totalorder %s123_s25, %s231_s1 }
  0x16   :  { %p129_p10 = pnand %p127_p9, %p124_p8 }
  0x18   :  { %132 = shalt.err (!%p129_p10)
}
  0x19   :  { %s133_s30 = scalar_lea.vmem %s27_s12, 64  ;;  %p138_p12 = scmp.lt.s32.totalorder %s27_s12, %s27_s12 }
  0x1a   :  { %p134_p11 = scmp.ne.s32.totalorder %s27_s12, %s133_s30  ;;  %p139_p13 = scmp.lt.s32.totalorder %s133_s30, %s133_s30 }
  0x1c   :  { %p140_p0 = por %p139_p13, %p138_p12 }
  0x1e   :  { %p141_p1 = pnand %p140_p0, %p134_p11 }
  0x20   :  { %144 = shalt.err (!%p141_p1)
}
  0x21   :  { %29 = dma.hbm_to_vmem [thread:$0]  %s231_s1, 64, %s27_s12, [#allocation6]  }
  0x22   :  { %167 = dma.done.wait [#allocation3], 32  }
  0x23   :  { %168 = vsyncadd [#allocation3], 4294967264 }
  0x24   :  { %169 = dma.done.wait [#allocation6], 64  }
  0x25   :  { %170 = vsyncadd [#allocation6], 4294967232  ;;  %v175_v0 = vmov 0   ;;  %v176_v1 = vmov 2   ;;  %v36_v2 = vld [vmem:[#allocation2] sm:$0x3]  ;;  %v38_v4 = vlaneseq }
  0x26   :  { %97 = vset.pattern.permute.xlu0 %v175_v0  ;;  %99 = vset.pattern.permute.xlu1 %v176_v1  ;;  %v177_v3 = vmov 1   ;;  %v37_v7 = vld [vmem:[#allocation5] sm:$0xf]  ;;  %s178_s1 = smov [#allocation7]   ;;  %vm73_vm0 = vcmask 25600  }
  0x27   :  { %44 = vperm.xlu0 %97, %v36_v2   ;;  %64 = vperm.xlu1 %99, %v36_v2   ;;  %v39_v5 = vshrl.u32 %v38_v4, 7  ;;  %s81_s4 = sshll.u32 %s178_s1, 4  ;;  %s82_s4 = int_to_ptr.vmem [resolvable:$true] %s81_s4 }
  0x28   :  { %s145_s5 = scalar_lea.vmem %s82_s4, 32  ;;  %p150_p3 = scmp.lt.s32.totalorder %s82_s4, %s82_s4 }
  0x29   :  { %v49_v6 = vsub.s32 0, %v39_v5  ;;  %v40_v8 = vsub.s32 3, %v39_v5  ;;  %v59_v10 = vsub.s32 1, %v39_v5  ;;  %v69_v11 = vsub.s32 2, %v39_v5  ;;  %p146_p2 = scmp.ne.s32.totalorder %s82_s4, %s145_s5  ;;  %p151_p4 = scmp.lt.s32.totalorder %s145_s5, %s145_s5 }
  0x2b   :  { %98 = vset.pattern.permute.xlu0 %v177_v3  ;;  %v50_v9 = vrot.slane %v37_v7, %v49_v6  ;;  %v41_v13 = vrot.slane %v37_v7, %v40_v8  ;;  %v60_v15 = vrot.slane %v37_v7, %v59_v10  ;;  %v70_v16 = vrot.slane %v37_v7, %v69_v11  ;;  %p152_p5 = por %p151_p4, %p150_p3 }
  0x2c   :  { %54 = vperm.xlu0 %98, %v36_v2  }
  0x2d   :  { %p153_p6 = pnand %p152_p5, %p146_p2 }
  0x30   :  { %100 = vset.pattern.permute.xlu0 %v176_v1 }
  0xa6   :  { %v45_v12 = vpop.permute.xlu0 %44  ;;  %v65_v17 = vpop.permute.xlu1 %64 }
  0xa7   :  { %v51_v14 = vmul.f32 %v50_v9, %v45_v12  ;;  %v71_v21 = vmul.f32 %v70_v16, %v65_v17 }
  0xa9   :  { %v52_v19 = vadd.f32 %v51_v14, %v41_v13 }
  0xab   :  { %v55_v18 = vpop.permute.xlu0 %54 }
  0xac   :  { %v61_v20 = vmul.f32 %v60_v15, %v55_v18 }
  0xae   :  { %v62_v22 = vadd.f32 %v61_v20, %v52_v19 }
  0xb0   :  { %v72_v23 = vadd.f32 %v71_v21, %v62_v22 }
  0xb2   :  { %74 = vst.msk [vmem:[#allocation7] sm:$0x3] %vm73_vm0, %v72_v23 }
  0xb3   :  { %156 = shalt.err (!%p153_p6)
}
  0xb4   :  { %s157_s8 = scalar_lea.hbm %s232_s2, 32 }
  0xb5   :  { %p158_p7 = scmp.ne.s32.totalorder %s232_s2, %s157_s8  ;;  %p161_p8 = scmp.lt.u32.totalorder %s157_s8, %s232_s2 }
  0xb7   :  { %p163_p9 = pnand %p161_p8, %p158_p7 }
  0xb9   :  { %166 = shalt.err (!%p163_p9)
}
  0xba   :  { %84 = dma.vmem_to_hbm [thread:$0]  %s82_s4, 32, %s232_s2, [#allocation4]  }
  0xbb   :  { %171 = dma.done.wait [#allocation4], 32  }
  0xbc   :  { %172 = vsyncadd [#allocation4], 4294967264 }
  0xbd   :  { %88 = vsyncpa [#allocation3], 1 }
  0xbe   :  { %89 = vsyncpa [#allocation6], 1 }
  0xbf   :  { %90 = vsyncpa [#allocation4], 1 }

</bundles_post_ra>
